<compile_context>
chip_gen: v7x
topology: tpu7x:2x2x1
jax: 0.10.0
libtpu: 0.0.40
codegen_flags: <defaults>
</compile_context>

<pallas_src>
import functools

import jax
import jax.numpy as jnp
from jax import lax
from jax.experimental import pallas as pl
from jax.experimental.pallas import tpu as pltpu


def _label_smooth_kernel(x_ref, t_ref, partial_ref, *, smoothing, n_total, tile_n):
    i = pl.program_id(0)

    x = x_ref[...].astype(jnp.float32)            # (TILE_N, C)
    t = t_ref[...]                                 # (TILE_N, 1) int32
    tn, c = x.shape

    # Numerically stable log-sum-exp pieces (single exp pass on the EUP).
    row_max = jnp.max(x, axis=-1, keepdims=True)                      # (TILE_N, 1)
    shifted = x - row_max                                             # (TILE_N, C)
    lse = jnp.log(jnp.sum(jnp.exp(shifted), axis=-1, keepdims=True))  # (TILE_N, 1)

    # Closed form (weights sum to 1):
    #   per_row = lse - off*sum(shifted) - (on-off)*shifted[target]
    sum_shifted = jnp.sum(shifted, axis=-1, keepdims=True)            # (TILE_N, 1)
    cols = lax.broadcasted_iota(jnp.int32, (tn, c), dimension=1)
    shifted_tgt = jnp.sum(jnp.where(cols == t, shifted, 0.0),
                          axis=-1, keepdims=True)                     # (TILE_N, 1)

    off = smoothing / (c - 1.0)
    on = 1.0 - smoothing
    per_row = lse - off * sum_shifted - (on - off) * shifted_tgt      # (TILE_N, 1)

    # Mask rows beyond N in the last (partial) tile.
    rows = i * tile_n + lax.broadcasted_iota(jnp.int32, (tn, 1), dimension=0)
    per_row = jnp.where(rows < n_total, per_row, 0.0)

    partial_ref[...] = jnp.broadcast_to(jnp.sum(per_row), (1, 1, 1))


def _choose_tile_n(n, c):
    if n <= 8:
        return n                                   # block == full array (always legal)
    rows = max(8, (2 << 20) // (4 * c))            # ~2 MiB of logits per tile
    rows = min(rows, 1024, n)
    return max(8, (rows // 8) * 8)                 # sublane-aligned


def label_smooth_loss(x, target, smoothing=0.1, tile_n=None):
    """x: (N, C) float, target: (N,) int -> scalar float32 loss."""
    n, c = x.shape
    if tile_n is None:
        tile_n = _choose_tile_n(n, c)
    num_blocks = pl.cdiv(n, tile_n)
    t2d = target.astype(jnp.int32).reshape(n, 1)

    kernel = functools.partial(
        _label_smooth_kernel, smoothing=float(smoothing), n_total=n, tile_n=tile_n)

    # Double-buffered x tile + lane-padded target tile, plus headroom.
    needed = 2 * (tile_n * c * 4 + tile_n * 128 * 4) + (1 << 20)
    vmem_limit = int(min(max(3 * needed, 32 << 20), 48 << 20))

    partials = pl.pallas_call(
        kernel,
        out_shape=jax.ShapeDtypeStruct((num_blocks, 1, 1), jnp.float32),
        grid=(num_blocks,),
        in_specs=[
            pl.BlockSpec((tile_n, c), lambda i: (i, 0)),
            pl.BlockSpec((tile_n, 1), lambda i: (i, 0)),
        ],
        out_specs=pl.BlockSpec((1, 1, 1), lambda i: (i, 0, 0)),
        compiler_params=pltpu.CompilerParams(
            dimension_semantics=("parallel",),
            vmem_limit_bytes=vmem_limit),
        cost_estimate=pl.CostEstimate(
            flops=5 * n * c,
            transcendentals=n * c,
            bytes_accessed=4 * n * c + 4 * n + 4 * num_blocks),
    )(x, t2d)

    # Finalize in plain JAX: divide by the true N exactly once.
    return jnp.sum(partials) / n


def _reference(x, target, smoothing=0.1):
    # Plain-JAX reference mirroring the PyTorch module.
    c = x.shape[-1]
    log_prob = jax.nn.log_softmax(x, axis=-1)
    weight = jnp.full_like(x, smoothing / (c - 1.0))
    onehot = jax.nn.one_hot(target, c, dtype=x.dtype)
    weight = weight * (1.0 - onehot) + onehot * (1.0 - smoothing)
    return jnp.mean(jnp.sum(-weight * log_prob, axis=-1))


if __name__ == "__main__":
    key = jax.random.PRNGKey(0)

    # Small test matching the module's expected layout: (N, C) logits, (N,) targets.
    kx, kt = jax.random.split(key)
    N, C = 8, 32
    x = jax.random.normal(kx, (N, C), dtype=jnp.float32)
    target = jax.random.randint(kt, (N,), 0, C, dtype=jnp.int32)

    loss = label_smooth_loss(x, target, smoothing=0.1)
    jax.block_until_ready(loss)
    ref = _reference(x, target, smoothing=0.1)
    assert jnp.allclose(loss, ref, atol=1e-5, rtol=1e-5), (loss, ref)

    # Second case exercising the row grid, a non-multiple-of-tile N, and masking.
    kx2, kt2 = jax.random.split(jax.random.PRNGKey(1))
    N2, C2 = 20, 160
    x2 = jax.random.normal(kx2, (N2, C2), dtype=jnp.float32)
    target2 = jax.random.randint(kt2, (N2,), 0, C2, dtype=jnp.int32)

    loss2 = label_smooth_loss(x2, target2, smoothing=0.1)
    jax.block_until_ready(loss2)
    ref2 = _reference(x2, target2, smoothing=0.1)
    assert jnp.allclose(loss2, ref2, atol=1e-5, rtol=1e-5), (loss2, ref2)

    print("KERNEL_OK")
</pallas_src>

<mosaic_0001>
module attributes {stable_mosaic.version = 11 : i64} {
  func.func @_label_smooth_kernel(%arg0: i32, %arg1: memref<8x32xf32, #tpu.memory_space<vmem>>, %arg2: memref<8x1xi32, #tpu.memory_space<vmem>>, %arg3: memref<1x1x1xf32, #tpu.memory_space<vmem>>) attributes {dimension_semantics = [#tpu.dimension_semantics<parallel>], iteration_bounds = array<i64: 1>, scalar_prefetch = 0 : i64, scratch_operands = 0 : i64, tpu.core_type = #tpu.core_type<tc>, window_params = [{transform_indices = @transform_0, window_bounds = array<i64: 8, 32>}, {transform_indices = @transform_1, window_bounds = array<i64: 8, 1>}, {transform_indices = @transform_2, window_bounds = array<i64: 1, 1, 1>}]} {
    %c0 = arith.constant 0 : index
    %c0_0 = arith.constant 0 : index
    %0 = vector.load %arg1[%c0, %c0_0] : memref<8x32xf32, #tpu.memory_space<vmem>>, vector<8x32xf32>
    %c0_1 = arith.constant 0 : index
    %c0_2 = arith.constant 0 : index
    %1 = vector.load %arg2[%c0_1, %c0_2] : memref<8x1xi32, #tpu.memory_space<vmem>>, vector<8x1xi32>
    %cst = arith.constant dense<0xFF800000> : vector<8xf32>
    %2 = vector.multi_reduction <maximumf>, %0, %cst [1] : vector<8x32xf32> to vector<8xf32>
    %3 = vector.shape_cast %2 : vector<8xf32> to vector<8x1xf32>
    %4 = vector.broadcast %3 : vector<8x1xf32> to vector<8x32xf32>
    %5 = arith.subf %0, %4 : vector<8x32xf32>
    %6 = math.exp %5 : vector<8x32xf32>
    %cst_3 = arith.constant dense<0.000000e+00> : vector<8xf32>
    %7 = vector.multi_reduction <add>, %6, %cst_3 [1] : vector<8x32xf32> to vector<8xf32>
    %8 = vector.shape_cast %7 : vector<8xf32> to vector<8x1xf32>
    %9 = math.log %8 : vector<8x1xf32>
    %cst_4 = arith.constant dense<0.000000e+00> : vector<8xf32>
    %10 = vector.multi_reduction <add>, %5, %cst_4 [1] : vector<8x32xf32> to vector<8xf32>
    %11 = vector.shape_cast %10 : vector<8xf32> to vector<8x1xf32>
    %12 = tpu.iota {dimensions = array<i32: 1>} : vector<8x32xi32>
    %13 = vector.broadcast %1 : vector<8x1xi32> to vector<8x32xi32>
    %14 = arith.cmpi eq, %12, %13 : vector<8x32xi32>
    %cst_5 = arith.constant 0.000000e+00 : f32
    %15 = vector.broadcast %cst_5 : f32 to vector<8x32xf32>
    %16 = arith.select %14, %5, %15 : vector<8x32xi1>, vector<8x32xf32>
    %cst_6 = arith.constant dense<0.000000e+00> : vector<8xf32>
    %17 = vector.multi_reduction <add>, %16, %cst_6 [1] : vector<8x32xf32> to vector<8xf32>
    %18 = vector.shape_cast %17 : vector<8xf32> to vector<8x1xf32>
    %cst_7 = arith.constant 0.0032258064 : f32
    %19 = vector.broadcast %cst_7 : f32 to vector<8x1xf32>
    %20 = arith.mulf %19, %11 : vector<8x1xf32>
    %21 = arith.subf %9, %20 : vector<8x1xf32>
    %cst_8 = arith.constant 0.896774172 : f32
    %22 = vector.broadcast %cst_8 : f32 to vector<8x1xf32>
    %23 = arith.mulf %22, %18 : vector<8x1xf32>
    %24 = arith.subf %21, %23 : vector<8x1xf32>
    %c8_i32 = arith.constant 8 : i32
    %25 = arith.muli %arg0, %c8_i32 : i32
    %26 = tpu.iota {dimensions = array<i32: 0>} : vector<8x1xi32>
    %27 = vector.broadcast %25 : i32 to vector<8x1xi32>
    %28 = arith.addi %27, %26 : vector<8x1xi32>
    %c8_i32_9 = arith.constant 8 : i32
    %29 = vector.broadcast %c8_i32_9 : i32 to vector<8x1xi32>
    %30 = arith.cmpi slt, %28, %29 : vector<8x1xi32>
    %cst_10 = arith.constant 0.000000e+00 : f32
    %31 = vector.broadcast %cst_10 : f32 to vector<8x1xf32>
    %32 = arith.select %30, %24, %31 : vector<8x1xi1>, vector<8x1xf32>
    %33 = vector.shape_cast %32 : vector<8x1xf32> to vector<1x8x1xf32>
    %cst_11 = arith.constant dense<0.000000e+00> : vector<1xf32>
    %34 = vector.multi_reduction <add>, %33, %cst_11 [1, 2] : vector<1x8x1xf32> to vector<1xf32>
    %35 = vector.shape_cast %34 : vector<1xf32> to vector<1x1x1xf32>
    %36 = vector.extract %35[0, 0, 0] : f32 from vector<1x1x1xf32>
    %37 = vector.broadcast %36 : f32 to vector<1x1x1xf32>
    %c0_12 = arith.constant 0 : index
    %c0_13 = arith.constant 0 : index
    %c0_14 = arith.constant 0 : index
    %38 = vector.load %arg3[%c0_12, %c0_13, %c0_14] : memref<1x1x1xf32, #tpu.memory_space<vmem>>, vector<1x1x1xf32>
    tpu.vector_store %arg3[%c0_12, %c0_13, %c0_14], %37 {strides = array<i32>} : memref<1x1x1xf32, #tpu.memory_space<vmem>>, vector<1x1x1xf32>,
    return
  }
  func.func @transform_0(%arg0: i32) -> (i32, i32) {
    %c0_i32 = arith.constant 0 : i32
    %c0_i32_0 = arith.constant 0 : i32
    return %arg0, %c0_i32 : i32, i32
  }
  func.func @transform_1(%arg0: i32) -> (i32, i32) {
    %c0_i32 = arith.constant 0 : i32
    %c0_i32_0 = arith.constant 0 : i32
    return %arg0, %c0_i32 : i32, i32
  }
  func.func @transform_2(%arg0: i32) -> (i32, i32, i32) {
    %c0_i32 = arith.constant 0 : i32
    %c0_i32_0 = arith.constant 0 : i32
    %c0_i32_1 = arith.constant 0 : i32
    return %arg0, %c0_i32, %c0_i32_0 : i32, i32, i32
  }
}

</mosaic_0001>

<bundles_post_ra>
// kernel: tpu_custom_call.1
= control target key start
LH: loop header
LB: loop body
LE: loop exit
PB: predicated region body
PF: predicated region fallthrough
CT: control target
= control target key end

     0   :  { %vm14_vm0 = vcmask 261120   ;;  %s150_s0 = inlined_call_operand.vmem [shape: f32[8,32], index: 0, kind: input, shape index: {}]   ;;  %s151_s1 = inlined_call_operand.vmem [shape: s32[8,1], index: 1, kind: input, shape index: {}]   ;;  %s152_s2 = inlined_call_operand.hbm [shape: f32[1,1,1], index: 2, kind: output, shape index: {}]  }
   0x1   :  { %v12_v0 = vld [vmem:[%s150_s0] sm:$0xff] }
   0x2   :  { %7 = vsyncpa [#allocation3], 0  ;;  %v15_v1 = vsel %vm14_vm0, %v12_v0, -inf  ;;  %v111_v2 = vmov 0   ;;  %v13_v3 = vld [vmem:[%s151_s1] sm:$0xff]  ;;  %v29_v7 = vlaneseq  ;;  %vm50_vm2 = vcmask 7168  }
   0x3   :  { %82 = vset.pattern.permute.xlu0 %v111_v2  ;;  %s112_s0 = smov [#allocation2]   ;;  %vm62_vm3 = vcmask 0  }
   0x4   :  { %16 = vmax.xlane.f32.xlu0 %v15_v1  ;;  %v30_v8 = vand.u32 127, %v29_v7  ;;  %s70_s1 = sshll.u32 %s112_s0, 4  ;;  %s71_s1 = int_to_ptr.vmem [resolvable:$true] %s70_s1 }
   0x5   :  { %s87_s14 = scalar_lea.vmem %s71_s1, 16  ;;  %s91_s15 = scalar_lea.vmem %s71_s1, 32 }
   0x6   :  { %p88_p0 = scmp.ne.s32.totalorder %s71_s1, %s87_s14  ;;  %p92_p1 = scmp.lt.s32.totalorder %s71_s1, %s71_s1 }
   0x7   :  { %p93_p2 = scmp.lt.s32.totalorder %s91_s15, %s87_s14 }
   0x9   :  { %p94_p3 = por %p93_p2, %p92_p1 }
   0xb   :  { %p95_p4 = pnand %p94_p3, %p88_p0 }
  0x1a   :  { %32 = vperm.xlu0 %82, %v13_v3  }
  0x91   :  { %v17_v4 = vpop.xlane.xlu0 %16 }
  0x92   :  { %v18_v5 = vsub.f32 %v12_v0, %v17_v4 }
  0x94   :  { %v19_v6 = vmul.f32 1.442695, %v18_v5  ;;  %v26_v12 = vsel %vm14_vm0, %v18_v5, 0.0 }
  0x96   :  { %83 = vpow2.f32 %v19_v6 }
  0x99   :  { %v33_v10 = vpop.permute.xlu0 %32 }
  0x9a   :  { %vm34_vm1 = vcmp.eq.s32.totalorder %v30_v8, %v33_v10 }
  0x9b   :  { %v35_v13 = vsel %vm34_vm1, %v18_v5, 0.0 }
  0x9c   :  { %v36_v14 = vsel %vm14_vm0, %v35_v13, 0.0 }
  0xa0   :  { %v84_v9 = vpop.eup %83 }
  0xa1   :  { %v21_v11 = vsel %vm14_vm0, %v84_v9, 0.0 }
  0xa2   :  { %22 = vadd.xlane.f32.xlu1 %v21_v11 }
  0xa6   :  { %27 = vadd.xlane.f32.xlu1 %v26_v12 }
  0xaa   :  { %37 = vadd.xlane.f32.xlu1 %v36_v14 }
 0x12f   :  { %v23_v15 = vpop.xlane.xlu1 %22 }
 0x130   :  { %85 = vlog2.f32 %v23_v15 }
 0x133   :  { %v28_v16 = vpop.xlane.xlu1 %27 }
 0x134   :  { %v39_v20 = vmul.f32 0.0032258064, %v28_v16 }
 0x137   :  { %v38_v18 = vpop.xlane.xlu1 %37 }
 0x138   :  { %v41_v22 = vmul.f32 0.8967742, %v38_v18 }
 0x13a   :  { %v86_v17 = vpop.eup %85 }
 0x13b   :  { %v25_v19 = vmul.f32 0.6931472, %v86_v17 }
 0x13d   :  { %v40_v21 = vsub.f32 %v25_v19, %v39_v20 }
 0x13f   :  { %v42_v23 = vsub.f32 %v40_v21, %v41_v22 }
 0x141   :  { %v51_v24 = vsel %vm50_vm2, %v42_v23, 0.0 }
 0x142   :  { %52 = vadd.xlane.f32.xlu1 %v51_v24 }
 0x1cf   :  { %v53_v25 = vpop.xlane.xlu1 %52 }
 0x1d0   :  { %v54_v26 = vrot.slane %v53_v25, 4 }
 0x1d2   :  { %v55_v27 = vadd.f32 %v54_v26, %v53_v25 }
 0x1d4   :  { %v56_v28 = vrot.slane %v55_v27, 2 }
 0x1d6   :  { %v57_v29 = vadd.f32 %v56_v28, %v55_v27 }
 0x1d8   :  { %v58_v30 = vrot.slane %v57_v29, 1 }
 0x1da   :  { %v59_v31 = vadd.f32 %v58_v30, %v57_v29 }
 0x1dc   :  { %78 = vpush %v59_v31 }
 0x20d   :  { %s79_s13 = spop %78 }
 0x20e   :  { %v61_v32 = vstv %s79_s13 }
 0x20f   :  { %63 = vst.msk [vmem:[#allocation2] sm:$0x1] %vm62_vm3, %v61_v32 }
 0x210   :  { %98 = shalt.err (!%p95_p4)
}
 0x211   :  { %s99_s18 = scalar_lea.hbm %s152_s2, 16 }
 0x212   :  { %p100_p5 = scmp.ne.s32.totalorder %s152_s2, %s99_s18  ;;  %p103_p6 = scmp.lt.u32.totalorder %s99_s18, %s152_s2 }
 0x214   :  { %p105_p7 = pnand %p103_p6, %p100_p5 }
 0x216   :  { %108 = shalt.err (!%p105_p7)
}
 0x217   :  { %73 = dma.vmem_to_hbm [thread:$0]  %s71_s1, 16, %s152_s2, [#allocation3]  }
 0x218   :  { %109 = dma.done.wait [#allocation3], 16  }
 0x219   :  { %110 = vsyncadd [#allocation3], 4294967280 }
 0x21a   :  { %77 = vsyncpa [#allocation3], 1 }

</bundles_post_ra>
